<compile_context>
chip_gen: v5e
topology: v5e:2x2
jax: 0.10.0
libtpu: 0.0.40
codegen_flags: <defaults>
</compile_context>

<pallas_src>
import functools
import math
import numpy as np
import jax
import jax.numpy as jnp
from jax.experimental import pallas as pl
from jax.experimental.pallas import tpu as pltpu

NCORES = 2  # leading "parallel" grid axis; shards across TensorCores where supported.


# ----------------------------------------------------------------------------
# Host-side glue: bboxes_iou + build_target (exact numpy port of the PyTorch code)
# ----------------------------------------------------------------------------
def bboxes_iou_np(bboxes_a, bboxes_b, xyxy=True, GIoU=False, DIoU=False, CIoU=False):
    if bboxes_a.shape[1] != 4 or bboxes_b.shape[1] != 4:
        raise IndexError
    if xyxy:
        tl = np.maximum(bboxes_a[:, None, :2], bboxes_b[:, :2])
        br = np.minimum(bboxes_a[:, None, 2:], bboxes_b[:, 2:])
        con_tl = np.minimum(bboxes_a[:, None, :2], bboxes_b[:, :2])
        con_br = np.maximum(bboxes_a[:, None, 2:], bboxes_b[:, 2:])
        rho2 = ((bboxes_a[:, None, 0] + bboxes_a[:, None, 2]
                 - (bboxes_b[:, 0] + bboxes_b[:, 2])) ** 2 / 4
                + (bboxes_a[:, None, 1] + bboxes_a[:, None, 3]
                   - (bboxes_b[:, 1] + bboxes_b[:, 3])) ** 2 / 4)
        w1 = bboxes_a[:, 2] - bboxes_a[:, 0]
        h1 = bboxes_a[:, 3] - bboxes_a[:, 1]
        w2 = bboxes_b[:, 2] - bboxes_b[:, 0]
        h2 = bboxes_b[:, 3] - bboxes_b[:, 1]
        area_a = np.prod(bboxes_a[:, 2:] - bboxes_a[:, :2], 1)
        area_b = np.prod(bboxes_b[:, 2:] - bboxes_b[:, :2], 1)
    else:
        tl = np.maximum(bboxes_a[:, None, :2] - bboxes_a[:, None, 2:] / 2,
                        bboxes_b[:, :2] - bboxes_b[:, 2:] / 2)
        br = np.minimum(bboxes_a[:, None, :2] + bboxes_a[:, None, 2:] / 2,
                        bboxes_b[:, :2] + bboxes_b[:, 2:] / 2)
        con_tl = np.minimum(bboxes_a[:, None, :2] - bboxes_a[:, None, 2:] / 2,
                            bboxes_b[:, :2] - bboxes_b[:, 2:] / 2)
        con_br = np.maximum(bboxes_a[:, None, :2] + bboxes_a[:, None, 2:] / 2,
                            bboxes_b[:, :2] + bboxes_b[:, 2:] / 2)
        rho2 = (((bboxes_a[:, None, :2] - bboxes_b[:, :2]) ** 2) / 4).sum(axis=-1)
        w1 = bboxes_a[:, 2]
        h1 = bboxes_a[:, 3]
        w2 = bboxes_b[:, 2]
        h2 = bboxes_b[:, 3]
        area_a = np.prod(bboxes_a[:, 2:], 1)
        area_b = np.prod(bboxes_b[:, 2:], 1)
    en = (tl < br).astype(tl.dtype).prod(axis=2)
    area_i = np.prod(br - tl, 2) * en
    area_u = area_a[:, None] + area_b - area_i
    iou = area_i / area_u
    if GIoU or DIoU or CIoU:
        if GIoU:
            area_c = np.prod(con_br - con_tl, 2)
            return iou - (area_c - area_u) / area_c
        if DIoU or CIoU:
            c2 = ((con_br - con_tl) ** 2).sum(axis=2) + 1e-16
            if DIoU:
                return iou - rho2 / c2
            elif CIoU:
                v = 4 / math.pi ** 2 * (np.arctan(w1 / h1)[:, None] - np.arctan(w2 / h2)) ** 2
                alpha = v / (1 - iou + v)
                return iou - (rho2 / c2 + v * alpha)
    return iou


def make_cfg(n_classes, n_anchors, batch, image_size):
    strides = [8, 16, 32]
    anchors = [[12, 16], [19, 36], [40, 28], [36, 75], [76, 55],
               [72, 146], [142, 110], [192, 243], [459, 401]]
    anch_masks = [[0, 1, 2], [3, 4, 5], [6, 7, 8]]
    cfg = dict(n_classes=n_classes, n_anchors=n_anchors, strides=strides,
               anchors=anchors, anch_masks=anch_masks, ignore_thre=0.5,
               masked_anchors=[], ref_anchors=[], grid_x=[], grid_y=[],
               anchor_w=[], anchor_h=[])
    for i in range(3):
        all_anchors_grid = [(w / strides[i], h / strides[i]) for w, h in anchors]
        masked_anchors = np.array([all_anchors_grid[j] for j in anch_masks[i]], dtype=np.float32)
        ref_anchors = np.zeros((len(all_anchors_grid), 4), dtype=np.float32)
        ref_anchors[:, 2:] = np.array(all_anchors_grid, dtype=np.float32)
        fsize = image_size // strides[i]
        grid_x = np.broadcast_to(np.arange(fsize, dtype=np.float32),
                                 (batch, n_anchors, fsize, fsize)).copy()
        grid_y = np.broadcast_to(np.arange(fsize, dtype=np.float32)[:, None],
                                 (batch, n_anchors, fsize, fsize)).copy()
        anchor_w = np.broadcast_to(masked_anchors[:, 0][None, :, None, None],
                                   (batch, n_anchors, fsize, fsize)).copy()
        anchor_h = np.broadcast_to(masked_anchors[:, 1][None, :, None, None],
                                   (batch, n_anchors, fsize, fsize)).copy()
        cfg['masked_anchors'].append(masked_anchors)
        cfg['ref_anchors'].append(ref_anchors)
        cfg['grid_x'].append(grid_x)
        cfg['grid_y'].append(grid_y)
        cfg['anchor_w'].append(anchor_w)
        cfg['anchor_h'].append(anchor_h)
    return cfg


# TODO(synk): build_target is inherently data-dependent (variable number of boxes,
# argmax over anchor IoUs, scatter writes); it is kept host-side in numpy rather
# than faking a Pallas equivalent.
def build_target_np(pred, labels, batchsize, fsize, n_ch, output_id, cfg):
    n_classes = cfg['n_classes']
    n_anchors = cfg['n_anchors']
    strides = cfg['strides']
    masked_anchors = cfg['masked_anchors'][output_id]
    ref_anchors = cfg['ref_anchors'][output_id]
    anch_mask = cfg['anch_masks'][output_id]
    ignore_thre = cfg['ignore_thre']

    tgt_mask = np.zeros((batchsize, n_anchors, fsize, fsize, 4 + n_classes), np.float32)
    obj_mask = np.ones((batchsize, n_anchors, fsize, fsize), np.float32)
    tgt_scale = np.zeros((batchsize, n_anchors, fsize, fsize, 2), np.float32)
    target = np.zeros((batchsize, n_anchors, fsize, fsize, n_ch), np.float32)

    nlabel = (labels.sum(axis=2) > 0).sum(axis=1)
    truth_x_all = (labels[:, :, 2] + labels[:, :, 0]) / (strides[output_id] * 2)
    truth_y_all = (labels[:, :, 3] + labels[:, :, 1]) / (strides[output_id] * 2)
    truth_w_all = (labels[:, :, 2] - labels[:, :, 0]) / strides[output_id]
    truth_h_all = (labels[:, :, 3] - labels[:, :, 1]) / strides[output_id]
    truth_i_all = truth_x_all.astype(np.int16)
    truth_j_all = truth_y_all.astype(np.int16)

    for b in range(batchsize):
        n = int(nlabel[b])
        if n == 0:
            continue
        truth_box = np.zeros((n, 4), np.float32)
        truth_box[:n, 2] = truth_w_all[b, :n]
        truth_box[:n, 3] = truth_h_all[b, :n]
        truth_i = truth_i_all[b, :n]
        truth_j = truth_j_all[b, :n]

        anchor_ious_all = bboxes_iou_np(truth_box, ref_anchors, xyxy=True, CIoU=True)
        best_n_all = anchor_ious_all.argmax(axis=1)
        best_n = best_n_all % 3
        best_n_mask = ((best_n_all == anch_mask[0])
                       | (best_n_all == anch_mask[1])
                       | (best_n_all == anch_mask[2]))
        if best_n_mask.sum() == 0:
            continue

        truth_box[:n, 0] = truth_x_all[b, :n]
        truth_box[:n, 1] = truth_y_all[b, :n]

        pred_ious = bboxes_iou_np(pred[b].reshape(-1, 4), truth_box, xyxy=False)
        pred_best_iou = pred_ious.max(axis=1)
        pred_best_iou = pred_best_iou > ignore_thre
        pred_best_iou = pred_best_iou.reshape(pred[b].shape[:3])
        obj_mask[b] = (~pred_best_iou).astype(np.float32)

        for ti in range(best_n.shape[0]):
            if best_n_mask[ti] == 1:
                i, j = int(truth_i[ti]), int(truth_j[ti])
                a = int(best_n[ti])
                obj_mask[b, a, j, i] = 1
                tgt_mask[b, a, j, i, :] = 1
                target[b, a, j, i, 0] = truth_x_all[b, ti] - float(np.int16(truth_x_all[b, ti]))
                target[b, a, j, i, 1] = truth_y_all[b, ti] - float(np.int16(truth_y_all[b, ti]))
                target[b, a, j, i, 2] = np.log(truth_w_all[b, ti] / masked_anchors[a, 0] + 1e-16)
                target[b, a, j, i, 3] = np.log(truth_h_all[b, ti] / masked_anchors[a, 1] + 1e-16)
                target[b, a, j, i, 4] = 1
                target[b, a, j, i, 5 + int(labels[b, ti, 4])] = 1
                tgt_scale[b, a, j, i, :] = np.sqrt(
                    2 - truth_w_all[b, ti] * truth_h_all[b, ti] / fsize / fsize)
    return obj_mask, tgt_mask, tgt_scale, target


# ----------------------------------------------------------------------------
# Pallas kernel: channel-on-sublane, f32 logits + bf16 aux, shared transcendentals
# ----------------------------------------------------------------------------
def _make_yolo_loss_kernel(c_pad):
    def kernel(x_ref, aux_ref, o_ref, acc_ref):
        i = pl.program_id(1)

        @pl.when(i == 0)
        def _init():
            acc_ref[...] = jnp.zeros_like(acc_ref)

        x = x_ref[...]                            # (c_pad, tn) f32 raw logits
        t = aux_ref[0].astype(jnp.float32)        # targets
        m = aux_ref[1].astype(jnp.float32)        # per-channel mask
        w = aux_ref[2].astype(jnp.float32)        # per-channel BCE weight

        # channels 0,1 and 4.. get a sigmoid; channels 2,3 (w/h) stay raw.
        ch = jax.lax.broadcasted_iota(jnp.int32, x.shape, 0)
        use_sig = jnp.logical_or(ch < 2, ch >= 4)

        # One shared exp(-|x|) serves the sigmoid and the BCE softplus tail.
        e = jnp.exp(-jnp.abs(x))
        one_pe = 1.0 + e
        r = pl.reciprocal(one_pe, approx=True)
        s = jnp.where(x >= 0, r, e * r)           # sigmoid(x)

        p = jnp.where(use_sig, s, x) * m          # masked "output"
        y = t * m                                 # masked target
        sq = (p - y) * (p - y)                    # squared-error tile (wh + l2 terms)

        # BCE in logits form: max(x,0) - x*t + log(1+exp(-|x|)); w folds in the
        # mask / tgt_scale^2 / obj_mask (weights are 0 wherever the reference
        # relies on BCE(0,0) -> 0).
        bce = (jnp.maximum(x, 0.0) - x * t + jnp.log(one_pe)) * w

        bce_red = jnp.sum(bce, axis=1, keepdims=True)   # (c_pad, 1) lane (XLU) reduce
        sq_red = jnp.sum(sq, axis=1, keepdims=True)     # (c_pad, 1)

        # Broadcast the (c_pad, 1) partials across the 128 accumulator lanes
        # (all lanes hold the same per-channel sum; wrapper reads lane 0).
        acc_ref[0:c_pad, :] += bce_red
        acc_ref[c_pad:2 * c_pad, :] += sq_red

        @pl.when(i == pl.num_programs(1) - 1)
        def _fin():
            o_ref[...] = acc_ref[...]

    return kernel


def _round_up(x, m):
    return ((x + m - 1) // m) * m


def yolo_packed_loss_pallas(logits, aux, tn):
    """logits: (C_pad8, N_pad) f32, aux: (3, C_pad8, N_pad) bf16.

    Returns (2, C_pad8): row 0 = per-channel BCE sums, row 1 = per-channel sq sums.
    """
    c_pad, n_pad = logits.shape
    assert n_pad % (NCORES * tn) == 0
    n_inner = n_pad // (NCORES * tn)
    kernel = _make_yolo_loss_kernel(c_pad)

    out = pl.pallas_call(
        kernel,
        out_shape=jax.ShapeDtypeStruct((NCORES * 2 * c_pad, 128), jnp.float32),
        grid_spec=pltpu.PrefetchScalarGridSpec(
            num_scalar_prefetch=0,
            grid=(NCORES, n_inner),
            in_specs=[
                pl.BlockSpec((c_pad, tn), lambda c, i: (0, c * n_inner + i)),
                pl.BlockSpec((3, c_pad, tn), lambda c, i: (0, 0, c * n_inner + i)),
            ],
            out_specs=pl.BlockSpec((2 * c_pad, 128), lambda c, i: (c, 0)),
            scratch_shapes=[pltpu.VMEM((2 * c_pad, 128), jnp.float32)],
        ),
        compiler_params=pltpu.CompilerParams(
            dimension_semantics=("parallel", "arbitrary")),
    )(logits, aux)
    # (NCORES, 2, c_pad, 128): every lane holds the same sum -> take lane 0, sum cores.
    return out.reshape(NCORES, 2, c_pad, 128)[..., 0].sum(axis=0)


# ----------------------------------------------------------------------------
# Device-side assembly + kernel + scalar reduction in ONE jit (fused HBM passes)
# ----------------------------------------------------------------------------
@functools.partial(jax.jit, static_argnames=("n_anchors", "n_ch", "c_pad", "n_pad", "tn"))
def _device_loss(x0, x1, x2, aux, *, n_anchors, n_ch, c_pad, n_pad, tn):
    cm = []
    for x in (x0, x1, x2):
        B = x.shape[0]
        f = x.shape[2]
        x5 = x.astype(jnp.float32).reshape(B, n_anchors, n_ch, f, f)
        # channel-major (n_ch, B*A*H*W); logits already arrive channel-major per (b, a).
        cm.append(jnp.transpose(x5, (2, 0, 1, 3, 4)).reshape(n_ch, -1))
    logits = jnp.concatenate(cm, axis=1)
    n = logits.shape[1]
    logits = jnp.pad(logits, ((0, c_pad - n_ch), (0, n_pad - n)))

    res = yolo_packed_loss_pallas(logits, aux, tn)   # (2, c_pad)
    bce_col = res[0]
    sq_col = res[1]

    loss_xy = jnp.sum(bce_col[0:2])
    loss_wh = 0.5 * jnp.sum(sq_col[2:4])
    loss_obj = bce_col[4]
    loss_cls = jnp.sum(bce_col[5:n_ch])
    loss_l2 = jnp.sum(sq_col[:n_ch])
    loss = loss_xy + loss_wh + loss_obj + loss_cls   # matches reference: l2 reported, not added
    return loss, loss_xy, loss_wh, loss_obj, loss_cls, loss_l2


# ----------------------------------------------------------------------------
# Full forward (three scales packed into one pallas_call)
# ----------------------------------------------------------------------------
def yolo_loss_forward(xin, labels, cfg):
    n_classes = cfg['n_classes']
    n_anchors = cfg['n_anchors']
    n_ch = 5 + n_classes

    aux_t, aux_m, aux_w = [], [], []

    for output_id, output in enumerate(xin):
        output = jnp.asarray(output, jnp.float32)
        B = output.shape[0]
        fsize = output.shape[2]

        out5 = output.reshape(B, n_anchors, n_ch, fsize, fsize)

        # pred computed on-device; only 4 channels are pulled to host for build_target.
        gx = jnp.asarray(cfg['grid_x'][output_id])
        gy = jnp.asarray(cfg['grid_y'][output_id])
        aw = jnp.asarray(cfg['anchor_w'][output_id])
        ah = jnp.asarray(cfg['anchor_h'][output_id])
        pred = jnp.stack([
            jax.nn.sigmoid(out5[:, :, 0]) + gx,
            jax.nn.sigmoid(out5[:, :, 1]) + gy,
            jnp.exp(out5[:, :, 2]) * aw,
            jnp.exp(out5[:, :, 3]) * ah,
        ], axis=-1)

        # TODO(synk): np.asarray(pred) is a blocking device->host sync; build_target is
        # data-dependent host code so this serialization is inherent.
        obj_mask, tgt_mask, tgt_scale, target = build_target_np(
            np.asarray(pred), labels, B, fsize, n_ch, output_id, cfg)

        obj = obj_mask[..., None]
        # per-channel mask: xy->tgt_mask, wh->tgt_mask*tgt_scale, obj->obj_mask, cls->tgt_mask
        m_full = np.concatenate([tgt_mask[..., 0:2],
                                 tgt_mask[..., 2:4] * tgt_scale,
                                 obj,
                                 tgt_mask[..., 4:]], axis=-1).astype(np.float32)
        # per-channel BCE weight: xy->tgt_scale^2, wh->0 (MSE via sq), obj->obj_mask, cls->tgt_mask
        w_full = np.concatenate([tgt_scale * tgt_scale,
                                 np.zeros_like(tgt_scale),
                                 obj,
                                 tgt_mask[..., 4:]], axis=-1).astype(np.float32)

        def cm(a):   # channel-major (n_ch, N_scale) on host
            return np.moveaxis(a, -1, 0).reshape(n_ch, -1)

        aux_t.append(cm(target))
        aux_m.append(cm(m_full))
        aux_w.append(cm(w_full))

    n_cells = sum(int(np.prod(x.shape)) // n_ch for x in xin)
    c_pad = _round_up(n_ch, 8)                                     # sublane pad only
    tn = min(2048, max(128, _round_up(-(-n_cells // NCORES), 128)))  # cells per tile
    n_pad = _round_up(n_cells, NCORES * tn)

    def pack(parts):   # zero-pad -> padded channels/cells contribute exactly 0
        a = np.concatenate(parts, axis=1)
        out = np.zeros((c_pad, n_pad), np.float32)
        out[:n_ch, :n_cells] = a
        return out

    # bf16 aux stream (targets / mask / weight): ~1e-3 relative drift, ~1.5x less HBM traffic.
    aux_np = np.stack([pack(aux_t), pack(aux_m), pack(aux_w)], axis=0)
    aux = jnp.asarray(aux_np, dtype=jnp.bfloat16)

    return _device_loss(xin[0], xin[1], xin[2], aux,
                        n_anchors=n_anchors, n_ch=n_ch, c_pad=c_pad,
                        n_pad=n_pad, tn=tn)


if __name__ == "__main__":
    # small synthetic config (module hardcodes image_size=608, n_classes=80;
    # scaled down here for a quick run -- semantics are identical)
    batch = 2
    n_classes = 3
    n_anchors = 3
    image_size = 128
    strides = [8, 16, 32]
    n_ch = 5 + n_classes

    cfg = make_cfg(n_classes, n_anchors, batch, image_size)

    key = jax.random.PRNGKey(0)
    keys = jax.random.split(key, 3)
    xin = []
    for i, s in enumerate(strides):
        fsize = image_size // s
        x = 0.5 * jax.random.normal(keys[i], (batch, n_anchors * n_ch, fsize, fsize),
                                    dtype=jnp.float32)
        xin.append(x)

    # labels: (batch, max_boxes, 5) = x1, y1, x2, y2, class   (pixel coords)
    labels = np.zeros((batch, 4, 5), np.float32)
    labels[0, 0] = [10.0, 20.0, 60.0, 80.0, 1.0]
    labels[0, 1] = [30.0, 5.0, 100.0, 50.0, 2.0]
    labels[1, 0] = [5.0, 5.0, 120.0, 120.0, 0.0]

    results = yolo_loss_forward(xin, labels, cfg)
    results = jax.block_until_ready(results)

    vals = [float(v) for v in results]
    assert all(np.isfinite(v) for v in vals), f"non-finite loss values: {vals}"
    print("KERNEL_OK")
</pallas_src>

<mosaic_0001>
module attributes {stable_mosaic.version = 11 : i64} {
  func.func @kernel(%arg0: i32, %arg1: i32, %arg2: memref<8x1024xf32, #tpu.memory_space<vmem>>, %arg3: memref<3x8x1024xbf16, #tpu.memory_space<vmem>>, %arg4: memref<16x128xf32, #tpu.memory_space<vmem>>, %arg5: memref<16x128xf32, #tpu.memory_space<vmem>>) attributes {dimension_semantics = [#tpu.dimension_semantics<parallel>, #tpu.dimension_semantics<arbitrary>], iteration_bounds = array<i64: 2, 1>, scalar_prefetch = 0 : i64, scratch_operands = 1 : i64, tpu.core_type = #tpu.core_type<tc>, window_params = [{transform_indices = @transform_0, window_bounds = array<i64: 8, 1024>}, {transform_indices = @transform_1, window_bounds = array<i64: 3, 8, 1024>}, {transform_indices = @transform_2, window_bounds = array<i64: 16, 128>}]} {
    %c0_i32 = arith.constant 0 : i32
    %0 = arith.cmpi eq, %arg1, %c0_i32 : i32
    %1 = arith.extui %0 : i1 to i32
    %c0_i32_0 = arith.constant 0 : i32
    %2 = arith.cmpi ne, %1, %c0_i32_0 : i32
    scf.if %2 {
      %cst_23 = arith.constant 0.000000e+00 : f32
      %58 = vector.broadcast %cst_23 : f32 to vector<16x128xf32>
      %c0_24 = arith.constant 0 : index
      %c0_25 = arith.constant 0 : index
      %59 = vector.load %arg5[%c0_24, %c0_25] : memref<16x128xf32, #tpu.memory_space<vmem>>, vector<16x128xf32>
      tpu.vector_store %arg5[%c0_24, %c0_25], %58 {strides = array<i32>} : memref<16x128xf32, #tpu.memory_space<vmem>>, vector<16x128xf32>,
    } else {
    }
    %c0 = arith.constant 0 : index
    %c0_1 = arith.constant 0 : index
    %3 = vector.load %arg2[%c0, %c0_1] : memref<8x1024xf32, #tpu.memory_space<vmem>>, vector<8x1024xf32>
    %c0_2 = arith.constant 0 : index
    %c0_3 = arith.constant 0 : index
    %c0_4 = arith.constant 0 : index
    %4 = vector.load %arg3[%c0_2, %c0_3, %c0_4] : memref<3x8x1024xbf16, #tpu.memory_space<vmem>>, vector<1x8x1024xbf16>
    %5 = vector.shape_cast %4 : vector<1x8x1024xbf16> to vector<8x1024xbf16>
    %6 = arith.extf %5 : vector<8x1024xbf16> to vector<8x1024xf32>
    %c1 = arith.constant 1 : index
    %c0_5 = arith.constant 0 : index
    %c0_6 = arith.constant 0 : index
    %7 = vector.load %arg3[%c1, %c0_5, %c0_6] : memref<3x8x1024xbf16, #tpu.memory_space<vmem>>, vector<1x8x1024xbf16>
    %8 = vector.shape_cast %7 : vector<1x8x1024xbf16> to vector<8x1024xbf16>
    %9 = arith.extf %8 : vector<8x1024xbf16> to vector<8x1024xf32>
    %c2 = arith.constant 2 : index
    %c0_7 = arith.constant 0 : index
    %c0_8 = arith.constant 0 : index
    %10 = vector.load %arg3[%c2, %c0_7, %c0_8] : memref<3x8x1024xbf16, #tpu.memory_space<vmem>>, vector<1x8x1024xbf16>
    %11 = vector.shape_cast %10 : vector<1x8x1024xbf16> to vector<8x1024xbf16>
    %12 = arith.extf %11 : vector<8x1024xbf16> to vector<8x1024xf32>
    %13 = tpu.iota {dimensions = array<i32: 0>} : vector<8x1024xi32>
    %c2_i32 = arith.constant 2 : i32
    %14 = vector.broadcast %c2_i32 : i32 to vector<8x1024xi32>
    %15 = arith.cmpi slt, %13, %14 : vector<8x1024xi32>
    %c4_i32 = arith.constant 4 : i32
    %16 = vector.broadcast %c4_i32 : i32 to vector<8x1024xi32>
    %17 = arith.cmpi sge, %13, %16 : vector<8x1024xi32>
    %18 = arith.ori %15, %17 : vector<8x1024xi1>
    %19 = math.absf %3 : vector<8x1024xf32>
    %cst = arith.constant 0.000000e+00 : f32
    %20 = vector.broadcast %cst : f32 to vector<8x1024xf32>
    %21 = arith.subf %20, %19 : vector<8x1024xf32>
    %22 = math.exp %21 : vector<8x1024xf32>
    %cst_9 = arith.constant 1.000000e+00 : f32
    %23 = vector.broadcast %cst_9 : f32 to vector<8x1024xf32>
    %24 = arith.addf %23, %22 : vector<8x1024xf32>
    %25 = tpu.reciprocal %24 {approx = true} : vector<8x1024xf32> -> vector<8x1024xf32>
    %cst_10 = arith.constant 0.000000e+00 : f32
    %26 = vector.broadcast %cst_10 : f32 to vector<8x1024xf32>
    %27 = arith.cmpf oge, %3, %26 : vector<8x1024xf32>
    %28 = arith.mulf %22, %25 : vector<8x1024xf32>
    %29 = arith.select %27, %25, %28 : vector<8x1024xi1>, vector<8x1024xf32>
    %30 = arith.select %18, %29, %3 : vector<8x1024xi1>, vector<8x1024xf32>
    %31 = arith.mulf %30, %9 : vector<8x1024xf32>
    %32 = arith.mulf %6, %9 : vector<8x1024xf32>
    %33 = arith.subf %31, %32 : vector<8x1024xf32>
    %34 = arith.subf %31, %32 : vector<8x1024xf32>
    %35 = arith.mulf %33, %34 : vector<8x1024xf32>
    %cst_11 = arith.constant 0.000000e+00 : f32
    %36 = vector.broadcast %cst_11 : f32 to vector<8x1024xf32>
    %37 = arith.maximumf %3, %36 : vector<8x1024xf32>
    %38 = arith.mulf %3, %6 : vector<8x1024xf32>
    %39 = arith.subf %37, %38 : vector<8x1024xf32>
    %40 = math.log %24 : vector<8x1024xf32>
    %41 = arith.addf %39, %40 : vector<8x1024xf32>
    %42 = arith.mulf %41, %12 : vector<8x1024xf32>
    %cst_12 = arith.constant dense<0.000000e+00> : vector<8xf32>
    %43 = vector.multi_reduction <add>, %42, %cst_12 [1] : vector<8x1024xf32> to vector<8xf32>
    %44 = vector.shape_cast %43 : vector<8xf32> to vector<8x1xf32>
    %cst_13 = arith.constant dense<0.000000e+00> : vector<8xf32>
    %45 = vector.multi_reduction <add>, %35, %cst_13 [1] : vector<8x1024xf32> to vector<8xf32>
    %46 = vector.shape_cast %45 : vector<8xf32> to vector<8x1xf32>
    %c0_14 = arith.constant 0 : index
    %c0_15 = arith.constant 0 : index
    %47 = vector.load %arg5[%c0_14, %c0_15] : memref<16x128xf32, #tpu.memory_space<vmem>>, vector<8x128xf32>
    %48 = vector.broadcast %44 : vector<8x1xf32> to vector<8x128xf32>
    %49 = arith.addf %47, %48 : vector<8x128xf32>
    %c0_16 = arith.constant 0 : index
    %c0_17 = arith.constant 0 : index
    %50 = vector.load %arg5[%c0_16, %c0_17] : memref<16x128xf32, #tpu.memory_space<vmem>>, vector<8x128xf32>
    tpu.vector_store %arg5[%c0_16, %c0_17], %49 {strides = array<i32>} : memref<16x128xf32, #tpu.memory_space<vmem>>, vector<8x128xf32>,
    %c8 = arith.constant 8 : index
    %c0_18 = arith.constant 0 : index
    %51 = vector.load %arg5[%c8, %c0_18] : memref<16x128xf32, #tpu.memory_space<vmem>>, vector<8x128xf32>
    %52 = vector.broadcast %46 : vector<8x1xf32> to vector<8x128xf32>
    %53 = arith.addf %51, %52 : vector<8x128xf32>
    %c8_19 = arith.constant 8 : index
    %c0_20 = arith.constant 0 : index
    %54 = vector.load %arg5[%c8_19, %c0_20] : memref<16x128xf32, #tpu.memory_space<vmem>>, vector<8x128xf32>
    tpu.vector_store %arg5[%c8_19, %c0_20], %53 {strides = array<i32>} : memref<16x128xf32, #tpu.memory_space<vmem>>, vector<8x128xf32>,
    %c0_i32_21 = arith.constant 0 : i32
    %55 = arith.cmpi eq, %arg1, %c0_i32_21 : i32
    %56 = arith.extui %55 : i1 to i32
    %c0_i32_22 = arith.constant 0 : i32
    %57 = arith.cmpi ne, %56, %c0_i32_22 : i32
    scf.if %57 {
      %c0_23 = arith.constant 0 : index
      %c0_24 = arith.constant 0 : index
      %58 = vector.load %arg5[%c0_23, %c0_24] : memref<16x128xf32, #tpu.memory_space<vmem>>, vector<16x128xf32>
      %c0_25 = arith.constant 0 : index
      %c0_26 = arith.constant 0 : index
      %59 = vector.load %arg4[%c0_25, %c0_26] : memref<16x128xf32, #tpu.memory_space<vmem>>, vector<16x128xf32>
      tpu.vector_store %arg4[%c0_25, %c0_26], %58 {strides = array<i32>} : memref<16x128xf32, #tpu.memory_space<vmem>>, vector<16x128xf32>,
    } else {
    }
    return
  }
  func.func @transform_0(%arg0: i32, %arg1: i32) -> (i32, i32) {
    %c1_i32 = arith.constant 1 : i32
    %0 = arith.muli %arg0, %c1_i32 : i32
    %1 = arith.addi %0, %arg1 : i32
    %c0_i32 = arith.constant 0 : i32
    %c0_i32_0 = arith.constant 0 : i32
    return %c0_i32, %1 : i32, i32
  }
  func.func @transform_1(%arg0: i32, %arg1: i32) -> (i32, i32, i32) {
    %c1_i32 = arith.constant 1 : i32
    %0 = arith.muli %arg0, %c1_i32 : i32
    %1 = arith.addi %0, %arg1 : i32
    %c0_i32 = arith.constant 0 : i32
    %c0_i32_0 = arith.constant 0 : i32
    %c0_i32_1 = arith.constant 0 : i32
    return %c0_i32, %c0_i32_0, %1 : i32, i32, i32
  }
  func.func @transform_2(%arg0: i32, %arg1: i32) -> (i32, i32) {
    %c0_i32 = arith.constant 0 : i32
    %c0_i32_0 = arith.constant 0 : i32
    return %arg0, %c0_i32 : i32, i32
  }
}

</mosaic_0001>

<bundles_post_ra>
// kernel: _device_loss.1
= control target key start
LH: loop header
LB: loop body
LE: loop exit
PB: predicated region body
PF: predicated region fallthrough
CT: control target
= control target key end

     0   :  { %s740_s9 = smov 0   ;;  %s742_s10 = smov 0   ;;  %s1081_s0 = inlined_call_operand.vmem [shape: f32[8,2048], index: 0, kind: input, shape index: {}]   ;;  %s1082_s1 = inlined_call_operand.vmem [shape: bf16[3,8,2048], index: 1, kind: input, shape index: {}]   ;;  %s1083_s2 = inlined_call_operand.vmem [shape: f32[32,128], index: 2, kind: output, shape index: {}]  }
   0x1   :  { %s744_s11 = smov 0   ;;  %s746_s12 = smov 0  }
   0x2   :  { %s748_s13 = smov 0  }
   0x3 LB: > { %s24_s14 = sadd.s32 1, %s719_s12  ;;  %p68_p1 = scmp.ne.s32.totalorder %s711_s10, %s707_s9  ;;  %s723_s13 = sphi %s748_s13, %s12_s13   ;;  %s719_s12 = sphi %s746_s12, %s1111_s12   ;;  %s715_s11 = sphi %s744_s11, %s1110_s11   ;;  %s711_s10 = sphi %s742_s10, %s1109_s10   ;;  %s707_s9 = sphi %s740_s9, %s1108_s9  }
   0x4   : > { %p26_p0 = scmp.ge.s32.totalorder %s24_s14, 2  ;;  %p69_p2 = scmp.eq.s32.totalorder %s723_s13, 0 }
   0x5   : > { %s61_s16 = sadd.s32 1, %s711_s10  ;;  %p576_p5 = scmp.ge.s32.totalorder %s723_s13, 2 }
   0x6   : > { %s1113_s14 = smov (%p26_p0, %s24_s14), 0  ;;  %p70_p3 = por %p69_p2, %p68_p1 }
   0x7   : > { %s58_s15 = ssub.s32 %s719_s12, %s1113_s14  ;;  %120 = sbr.rel (%p576_p5) target bundleno = 28 (0x1c), region = 16 }
   0x8   : > { %p59_p4 = scmp.eq.s32.totalorder %s58_s15, 0 }
   0xa   : > { %s775_s17 = scalar_select %p59_p4, %s711_s10, %s61_s16  }
   0xc   : > { %134 = sbr.rel (!%p70_p3) target bundleno = 28 (0x1c), region = 24  ;;  %s136_s18 = sand.u32 (%p70_p3), 1, %s711_s10  }
   0xd   : > { %s594_s19 = sshll.u32 (%p70_p3), %s719_s12, 5  ;;  %s595_s20 = smul.u32 (%p70_p3), 96, %s136_s18 }
   0xe   : > { %s142_s23 = scalar_lea.vmem (%p70_p3), %s1082_s1, %s594_s19 }
   0xf   : > { %v155_v0 = vld [vmem:[%s142_s23] sm:$0xff] (%p70_p3)  ;;  %v157_v1 = vld [vmem:[%s142_s23 + $0x8] sm:$0xff] (%p70_p3)  ;;  %v159_v2 = vld [vmem:[%s142_s23 + $0x10] sm:$0xff] (%p70_p3)  ;;  %s138_s24 = scalar_lea.vmem (%p70_p3), [#allocation3], %s595_s20 }
  0x10   : > { %156 = vst [vmem:[%s138_s24] sm:$0xff] (%p70_p3), %v155_v0  ;;  %v161_v3 = vld [vmem:[%s142_s23 + $0x18] sm:$0xff] (%p70_p3)  ;;  %v163_v4 = vld [vmem:[%s142_s23 + $0x40] sm:$0xff] (%p70_p3)  ;;  %v165_v5 = vld [vmem:[%s142_s23 + $0x48] sm:$0xff] (%p70_p3) }
  0x11   : > { %158 = vst [vmem:[%s138_s24 + $0x8] sm:$0xff] %v157_v1  ;;  %v167_v6 = vld [vmem:[%s142_s23 + $0x50] sm:$0xff]  ;;  %v169_v7 = vld [vmem:[%s142_s23 + $0x58] sm:$0xff]  ;;  %v171_v8 = vld [vmem:[%s142_s23 + $0x80] sm:$0xff] }
  0x12   : > { %160 = vst [vmem:[%s138_s24 + $0x10] sm:$0xff] %v159_v2  ;;  %v173_v9 = vld [vmem:[%s142_s23 + $0x88] sm:$0xff]  ;;  %v175_v10 = vld [vmem:[%s142_s23 + $0x90] sm:$0xff]  ;;  %v177_v11 = vld [vmem:[%s142_s23 + $0x98] sm:$0xff] }
  0x13   : > { %162 = vst [vmem:[%s138_s24 + $0x18] sm:$0xff] %v161_v3 }
  0x14   : > { %164 = vst [vmem:[%s138_s24 + $0x20] sm:$0xff] %v163_v4 }
  0x15   : > { %166 = vst [vmem:[%s138_s24 + $0x28] sm:$0xff] %v165_v5 }
  0x16   : > { %168 = vst [vmem:[%s138_s24 + $0x30] sm:$0xff] %v167_v6 }
  0x17   : > { %170 = vst [vmem:[%s138_s24 + $0x38] sm:$0xff] %v169_v7 }
  0x18   : > { %172 = vst [vmem:[%s138_s24 + $0x40] sm:$0xff] %v171_v8 }
  0x19   : > { %174 = vst [vmem:[%s138_s24 + $0x48] sm:$0xff] %v173_v9 }
  0x1a   : > { %176 = vst [vmem:[%s138_s24 + $0x50] sm:$0xff] %v175_v10 }
  0x1b   : > { %178 = vst [vmem:[%s138_s24 + $0x58] sm:$0xff] %v177_v11 }
  0x1c PF: > { %p579_p6 = scmp.ge.s32.totalorder %s723_s13, 1  ;;  %p183_p7 = scmp.lt.s32.totalorder %s723_s13, 3 }
  0x1e   : > { %p184_p8 = pnand %p579_p6, %p183_p7 }
  0x1f   : > { %s190_s25 = sand.u32 (!%p184_p8), 1, %s707_s9   ;;  %s580_s26 = sshll.u32 (!%p184_p8), %s715_s11, 3 }
  0x20   : > { %187 = sbr.rel (%p184_p8) target bundleno = 220 (0xdc), region = 47  ;;  %p219_p9 = scmp.lt.s32.totalorder (!%p184_p8), %s580_s26, 15 }
  0x21   : > { %s596_s27 = smul.u32 (!%p184_p8), 96, %s190_s25  ;;  %s582_s5 = sshll.u32 (!%p184_p8), %s715_s11, 1 }
  0x22   : > { %p228_p10 = scmp.lt.s32.totalorder (!%p184_p8), %s582_s5, 3 }
  0x23   : > { %s787_s28 = scalar_lea.vmem (!%p184_p8), [#allocation3], %s596_s27 }
  0x25   : > { %s1115_s26 = smov (!%p219_p9, %s580_s26), 15  ;;  %v790_v12 = vld [vmem:[%s787_s28] sm:$0xff]  ;;  %v793_v13 = vld [vmem:[%s787_s28 + $0x8] sm:$0xff]  ;;  %v796_v14 = vld [vmem:[%s787_s28 + $0x10] sm:$0xff]  ;;  %s1117_s5 = smov (!%p228_p10, %s582_s5), 3 }
  0x26   : > { %v799_v15 = vld [vmem:[%s787_s28 + $0x18] sm:$0xff]  ;;  %v802_v16 = vld [vmem:[%s787_s28 + $0x40] sm:$0xff]  ;;  %s581_s29 = sshll.u32 %s1115_s26, 3  ;;  %v251_v17 = vunpack.c.l.bf16 %v790_v12  ;;  %v806_v18 = vld [vmem:[%s787_s28 + $0x48] sm:$0xff]  ;;  %v252_v19 = vunpack.c.h.bf16 %v790_v12  ;;  %v253_v20 = vunpack.c.l.bf16 %v793_v13  ;;  %v254_v21 = vunpack.c.h.bf16 %v793_v13  ;;  %s583_s6 = sshll.u32 %s1117_s5, 3 }
  0x27   : > { %s222_s4 = scalar_lea.vmem %s1081_s0, %s581_s29  ;;  %v255_v22 = vunpack.c.l.bf16 %v796_v14  ;;  %v816_v23 = vld [vmem:[%s787_s28 + $0x50] sm:$0xff]  ;;  %v1086_v27 = vunpack.c.h.bf16 %v796_v14  ;;  %v1085_v28 = vunpack.c.l.bf16 %v799_v15  ;;  %v1084_v29 = vunpack.c.h.bf16 %v799_v15  ;;  %v871_v6 = vld [vmem:[%s787_s28 + $0x58] sm:$0xff]  ;;  %s231_s9 = scalar_lea.vmem %s1083_s2, %s583_s6 }
  0x28   : > { %v818_v24 = vld [vmem:[%s222_s4] sm:$0xff]  ;;  %v820_v25 = vld [vmem:[%s222_s4 + $0x8] sm:$0xff]  ;;  %v822_v26 = vld [vmem:[%s222_s4 + $0x10] sm:$0xff] }
  0x29   : > { %v828_v31 = vld [vmem:[%s222_s4 + $0x18] sm:$0xff]  ;;  %v830_v32 = vld [vmem:[%s222_s4 + $0x20] sm:$0xff]  ;;  %v832_v33 = vld [vmem:[%s222_s4 + $0x28] sm:$0xff]  ;;  %v290_v36 = vand.u32 2147483647, %v818_v24  ;;  %v402_v37 = vmax.f32 %v818_v24, 0.0  ;;  %v410_v62 = vmul.f32 %v251_v17, %v818_v24  ;;  %v411_v63 = vmul.f32 %v252_v19, %v820_v25 }
  0x2a   : > { %v838_v38 = vld [vmem:[%s222_s4 + $0x30] sm:$0xff]  ;;  %v840_v39 = vld [vmem:[%s222_s4 + $0x38] sm:$0xff]  ;;  %v291_v42 = vand.u32 2147483647, %v820_v25  ;;  %v292_v43 = vand.u32 2147483647, %v822_v26  ;;  %v412_v1 = vmul.f32 %v253_v20, %v822_v26  ;;  %v413_v2 = vmul.f32 %v254_v21, %v828_v31 }
  0x2b   : > { %v293_v45 = vand.u32 2147483647, %v828_v31  ;;  %v294_v46 = vand.u32 2147483647, %v830_v32  ;;  %v295_v47 = vand.u32 2147483647, %v832_v33  ;;  %v414_v4 = vmul.f32 %v255_v22, %v830_v32 }
  0x2c   : > { %v296_v48 = vand.u32 2147483647, %v838_v38  ;;  %v297_v49 = vand.u32 2147483647, %v840_v39  ;;  %v298_v50 = vsub.f32 0.0, %v290_v36  ;;  %v299_v51 = vsub.f32 0.0, %v291_v42 }
  0x2d   : > { %v300_v52 = vsub.f32 0.0, %v292_v43  ;;  %v301_v53 = vsub.f32 0.0, %v293_v45  ;;  %v302_v54 = vsub.f32 0.0, %v294_v46  ;;  %v303_v55 = vsub.f32 0.0, %v295_v47 }
  0x2e   : > { %v304_v56 = vsub.f32 0.0, %v296_v48  ;;  %v305_v57 = vsub.f32 0.0, %v297_v49  ;;  %v306_v58 = vmul.f32 1.442695, %v298_v50  ;;  %v308_v59 = vmul.f32 1.442695, %v299_v51 }
  0x2f   : > { %v310_v60 = vmul.f32 1.442695, %v300_v52  ;;  %v312_v61 = vmul.f32 1.442695, %v301_v53  ;;  %v314_v0 = vmul.f32 1.442695, %v302_v54  ;;  %v415_v5 = vmul.f32 %v1086_v27, %v832_v33 }
  0x30   : > { %637 = vpow2.f32 %v306_v58  ;;  %v316_v3 = vmul.f32 1.442695, %v303_v55  ;;  %v318_v7 = vmul.f32 1.442695, %v304_v56  ;;  %v320_v8 = vmul.f32 1.442695, %v305_v57 }
  0x31   : > { %639 = vpow2.f32 %v308_v59  ;;  %v403_v9 = vmax.f32 %v820_v25, 0.0  ;;  %v404_v10 = vmax.f32 %v822_v26, 0.0  ;;  %v405_v11 = vmax.f32 %v828_v31, 0.0  ;;  %v897_v57 = vld [vmem:[%s787_s28 + $0x20] sm:$0xff] }
  0x32   : > { %641 = vpow2.f32 %v310_v60  ;;  %v406_v36 = vmax.f32 %v830_v32, 0.0  ;;  %v407_v42 = vmax.f32 %v832_v33, 0.0  ;;  %v408_v43 = vmax.f32 %v838_v38, 0.0 }
  0x33   : > { %643 = vpow2.f32 %v312_v61  ;;  %v416_v45 = vmul.f32 %v1085_v28, %v838_v38  ;;  %v409_v47 = vmax.f32 %v840_v39, 0.0  ;;  %v417_v48 = vmul.f32 %v1084_v29, %v840_v39 }
  0x34   : > { %645 = vpow2.f32 %v314_v0  ;;  %v888_v51 = vsub.f32 %v402_v37, %v410_v62  ;;  %v890_v52 = vsub.f32 %v403_v9, %v411_v63  ;;  %v892_v55 = vsub.f32 %v404_v10, %v412_v1  ;;  %v906_v62 = vld [vmem:[%s787_s28 + $0x28] sm:$0xff]  ;;  %v914_v9 = vld [vmem:[%s787_s28 + $0x38] sm:$0xff] }
  0x35   : > { %647 = vpow2.f32 %v316_v3  ;;  %v894_v56 = vsub.f32 %v405_v11, %v413_v2  ;;  %v899_v60 = vsub.f32 %v406_v36, %v414_v4  ;;  %v901_v61 = vsub.f32 %v407_v42, %v415_v5  ;;  %v911_v2 = vld [vmem:[%s787_s28 + $0x30] sm:$0xff] }
  0x36   : > { %v638_v49 = vpop.eup %637  ;;  %649 = vpow2.f32 %v318_v7  ;;  %v903_v37 = vsub.f32 %v408_v43, %v416_v45  ;;  %v908_v1 = vsub.f32 %v409_v47, %v417_v48  ;;  %v285_v3 = vlaneseq }
  0x37   : > { %v640_v53 = vpop.eup %639  ;;  %651 = vpow2.f32 %v320_v8  ;;  %v322_v54 = vadd.f32 1.0, %v638_v49  ;;  %v264_v4 = vunpack.c.l.bf16 %v897_v57  ;;  %v265_v5 = vunpack.c.h.bf16 %v897_v57 }
  0x38   : > { %v642_v58 = vpop.eup %641  ;;  %v323_v59 = vadd.f32 1.0, %v640_v53  ;;  %v266_v36 = vunpack.c.l.bf16 %v906_v62  ;;  %v267_v42 = vunpack.c.h.bf16 %v906_v62  ;;  %v286_v48 = vshrl.u32 %v285_v3, 7 }
  0x39   : > { %v644_v63 = vpop.eup %643  ;;  %v324_v0 = vadd.f32 1.0, %v642_v58  ;;  %653 = vrcp.f32 %v322_v54  ;;  %vm338_vm0 = vcmp.ge.f32.partialorder %v818_v24, 0.0  ;;  %vm339_vm1 = vcmp.ge.f32.partialorder %v820_v25, 0.0 }
  0x3a   : > { %v646_v7 = vpop.eup %645  ;;  %v325_v8 = vadd.f32 1.0, %v644_v63  ;;  %655 = vrcp.f32 %v323_v59  ;;  %vm340_vm2 = vcmp.ge.f32.partialorder %v822_v26, 0.0  ;;  %vm341_vm3 = vcmp.ge.f32.partialorder %v828_v31, 0.0 }
  0x3b   : > { %v648_v10 = vpop.eup %647  ;;  %v326_v11 = vadd.f32 1.0, %v646_v7  ;;  %657 = vrcp.f32 %v324_v0  ;;  %vm287_vm4 = vcmp.lt.s32.totalorder %v286_v48, 2  ;;  %vm288_vm5 = vcmp.ge.s32.totalorder %v286_v48, 4 }
  0x3c   : > { %v650_v43 = vpop.eup %649  ;;  %v327_v45 = vadd.f32 1.0, %v648_v10  ;;  %659 = vrcp.f32 %v325_v8  ;;  %vm342_vm6 = vcmp.ge.f32.partialorder %v830_v32, 0.0  ;;  %vm343_vm7 = vcmp.ge.f32.partialorder %v832_v33, 0.0  ;;  %vm958_vm10 = vmor %vm287_vm4, %vm288_vm5 }
  0x3d   : > { %v652_v29 = vpop.eup %651  ;;  %v328_v50 = vadd.f32 1.0, %v650_v43  ;;  %661 = vrcp.f32 %v326_v11  ;;  %vm344_vm8 = vcmp.ge.f32.partialorder %v838_v38, 0.0  ;;  %vm345_vm9 = vcmp.ge.f32.partialorder %v840_v39, 0.0 }
  0x3e   : > { %v329_v44 = vadd.f32 1.0, %v652_v29  ;;  %663 = vrcp.f32 %v327_v45  ;;  %v936_v47 = vmul.f32 %v264_v4, %v251_v17  ;;  %v954_v17 = vmul.f32 %v267_v42, %v254_v21 }
  0x3f   : > { %v654_v41 = vpop.eup %653  ;;  %665 = vrcp.f32 %v328_v50  ;;  %v1094_v62 = vunpack.c.h.bf16 %v796_v14 }
  0x40   : > { %v656_v3 = vpop.eup %655  ;;  %667 = vrcp.f32 %v329_v44  ;;  %v346_v28 = vmul.f32 %v654_v41, %v638_v49  ;;  %v942_v49 = vmul.f32 %v265_v5, %v252_v19  ;;  %v1100_v19 = vunpack.c.l.bf16 %v871_v6 }
  0x41   : > { %v658_v46 = vpop.eup %657  ;;  %669 = vlog2.f32 %v322_v54  ;;  %v347_v40 = vmul.f32 %v656_v3, %v640_v53 }
  0x42   : > { %v660_v35 = vpop.eup %659  ;;  %671 = vlog2.f32 %v323_v59  ;;  %v348_v27 = vmul.f32 %v658_v46, %v642_v58  ;;  %v948_v58 = vmul.f32 %v266_v36, %v253_v20 }
  0x43   : > { %v662_v34 = vpop.eup %661  ;;  %673 = vlog2.f32 %v324_v0  ;;  %v349_v30 = vmul.f32 %v660_v35, %v644_v63  ;;  %v354_v63 = vsel %vm338_vm0, %v654_v41, %v346_v28  ;;  %v355_v20 = vsel %vm339_vm1, %v656_v3, %v347_v40 }
  0x44   : > { %v664_v53 = vpop.eup %663  ;;  %675 = vlog2.f32 %v325_v8  ;;  %v350_v54 = vmul.f32 %v662_v34, %v646_v7  ;;  %v356_v21 = vsel %vm340_vm2, %v658_v46, %v348_v27  ;;  %v1089_v28 = vunpack.c.l.bf16 %v911_v2 }
  0x45   : > { %v666_v12 = vpop.eup %665  ;;  %677 = vlog2.f32 %v326_v11  ;;  %v351_v59 = vmul.f32 %v664_v53, %v648_v10  ;;  %v357_v7 = vsel %vm341_vm3, %v660_v35, %v349_v30  ;;  %v362_v27 = vsel %vm958_vm10, %v354_v63, %v818_v24 }
  0x46   : > { %v668_v13 = vpop.eup %667  ;;  %679 = vlog2.f32 %v327_v45  ;;  %v352_v0 = vmul.f32 %v666_v12, %v650_v43  ;;  %v358_v10 = vsel %vm342_vm6, %v662_v34, %v350_v54  ;;  %v382_v40 = vmul.f32 %v1089_v28, %v255_v22 }
  0x47   : > { %v670_v8 = vpop.eup %669  ;;  %681 = vlog2.f32 %v328_v50  ;;  %v353_v11 = vmul.f32 %v668_v13, %v652_v29  ;;  %v363_v30 = vsel %vm958_vm10, %v355_v20, %v820_v25  ;;  %v359_v34 = vsel %vm343_vm7, %v664_v53, %v351_v59 }
  0x48   : > { %v672_v41 = vpop.eup %671  ;;  %v427_v45 = vmul.f32 0.6931472, %v670_v8  ;;  %683 = vlog2.f32 %v329_v44  ;;  %v364_v22 = vsel %vm958_vm10, %v356_v21, %v822_v26  ;;  %v365_v44 = vsel %vm958_vm10, %v357_v7, %v828_v31 }
  0x49   : > { %v674_v29 = vpop.eup %673  ;;  %v429_v35 = vmul.f32 0.6931472, %v672_v41  ;;  %v360_v25 = vsel %vm344_vm8, %v666_v12, %v352_v0  ;;  %v366_v43 = vsel %vm958_vm10, %v358_v10, %v830_v32  ;;  %v361_v26 = vsel %vm345_vm9, %v668_v13, %v353_v11 }
  0x4a   : > { %v676_v46 = vpop.eup %675  ;;  %v431_v50 = vmul.f32 0.6931472, %v674_v29  ;;  %v442_v24 = vadd.f32 %v427_v45, %v888_v51  ;;  %v370_v31 = vmul.f32 %v362_v27, %v264_v4  ;;  %v1090_v12 = vunpack.c.l.bf16 %v802_v16 }
  0x4b   : > { %v678_v48 = vpop.eup %677  ;;  %v433_v3 = vmul.f32 0.6931472, %v676_v46  ;;  %v443_v53 = vadd.f32 %v429_v35, %v890_v52  ;;  %v371_v32 = vmul.f32 %v363_v30, %v265_v5  ;;  %v1091_v21 = vunpack.c.h.bf16 %v802_v16 }
  0x4c   : > { %v680_v54 = vpop.eup %679  ;;  %v435_v59 = vmul.f32 0.6931472, %v678_v48  ;;  %v444_v51 = vadd.f32 %v431_v50, %v892_v55  ;;  %v450_v63 = vmul.f32 %v442_v24, %v1090_v12  ;;  %v372_v4 = vmul.f32 %v364_v22, %v266_v36 }
  0x4d   : > { %v682_v20 = vpop.eup %681  ;;  %v437_v0 = vmul.f32 0.6931472, %v680_v54  ;;  %v445_v52 = vadd.f32 %v433_v3, %v894_v56  ;;  %v451_v13 = vmul.f32 %v443_v53, %v1091_v21  ;;  %v1092_v11 = vunpack.c.l.bf16 %v806_v18 }
  0x4e   : > { %v684_v7 = vpop.eup %683  ;;  %v439_v8 = vmul.f32 0.6931472, %v682_v20  ;;  %v446_v55 = vadd.f32 %v435_v59, %v899_v60  ;;  %v373_v57 = vmul.f32 %v365_v44, %v267_v42  ;;  %v1093_v56 = vunpack.c.h.bf16 %v806_v18 }
  0x4f   : > { %v452_v10 = vmul.f32 %v444_v51, %v1092_v11  ;;  %v441_v5 = vmul.f32 0.6931472, %v684_v7  ;;  %v447_v28 = vadd.f32 %v437_v0, %v901_v61  ;;  %v458_v41 = vadd.f32 %v451_v13, %v450_v63 }
  0x50   : > { %v453_v16 = vmul.f32 %v445_v52, %v1093_v56  ;;  %v448_v45 = vadd.f32 %v439_v8, %v903_v37  ;;  %v367_v36 = vsel %vm958_vm10, %v359_v34, %v832_v33  ;;  %v368_v60 = vsel %vm958_vm10, %v360_v25, %v838_v38 }
  0x51   : > { %v1095_v42 = vunpack.c.h.bf16 %v911_v2  ;;  %v1096_v61 = vunpack.c.l.bf16 %v816_v23  ;;  %v459_v30 = vadd.f32 %v458_v41, %v452_v10  ;;  %v369_v37 = vsel %vm958_vm10, %v361_v26, %v840_v39 }
  0x52   : > { %v1097_v29 = vunpack.c.l.bf16 %v911_v2  ;;  %v449_v35 = vadd.f32 %v441_v5, %v908_v1  ;;  %v386_v38 = vsub.f32 %v370_v31, %v936_v47  ;;  %v387_v14 = vsub.f32 %v371_v32, %v942_v49 }
  0x53   : > { %v383_v27 = vmul.f32 %v1095_v42, %v1094_v62  ;;  %v454_v18 = vmul.f32 %v446_v55, %v1096_v61  ;;  %v388_v34 = vsub.f32 %v372_v4, %v948_v58  ;;  %v1098_v22 = vunpack.c.h.bf16 %v816_v23 }
  0x54   : > { %v374_v33 = vmul.f32 %v366_v43, %v1097_v29  ;;  %v460_v46 = vadd.f32 %v459_v30, %v453_v16  ;;  %v1099_v50 = vmov %v1095_v42  ;;  %v389_v39 = vsub.f32 %v373_v57, %v954_v17 }
  0x55   : > { %v455_v44 = vmul.f32 %v447_v28, %v1098_v22  ;;  %v375_v24 = vmul.f32 %v367_v36, %v1099_v50  ;;  %v456_v25 = vmul.f32 %v448_v45, %v1100_v19  ;;  %v1101_v1 = vunpack.c.l.bf16 %v914_v9 }
  0x56   : > { %v1102_v47 = vunpack.c.l.bf16 %v799_v15  ;;  %v394_v48 = vmul.f32 %v386_v38, %v386_v38  ;;  %v461_v23 = vadd.f32 %v460_v46, %v454_v18  ;;  %v390_v3 = vsub.f32 %v374_v33, %v382_v40 }
  0x57   : > { %v376_v43 = vmul.f32 %v368_v60, %v1101_v1  ;;  %v1103_v49 = vmov %v1101_v1  ;;  %v395_v53 = vmul.f32 %v387_v14, %v387_v14  ;;  %v396_v26 = vmul.f32 %v388_v34, %v388_v34 }
  0x58   : > { %v384_v58 = vmul.f32 %v1103_v49, %v1102_v47  ;;  %v1104_v2 = vunpack.c.h.bf16 %v871_v6  ;;  %v1105_v17 = vunpack.c.h.bf16 %v914_v9  ;;  %v1106_v59 = vunpack.c.h.bf16 %v799_v15 }
  0x59   : > { %v462_v63 = vadd.f32 %v461_v23, %v455_v44  ;;  %v391_v32 = vsub.f32 %v375_v24, %v383_v27  ;;  %v397_v20 = vmul.f32 %v389_v39, %v389_v39  ;;  %v467_v0 = vadd.f32 %v395_v53, %v394_v48 }
  0x5a   : > { %v457_v31 = vmul.f32 %v449_v35, %v1104_v2  ;;  %v377_v54 = vmul.f32 %v369_v37, %v1105_v17  ;;  %v1107_v51 = vmov %v1105_v17  ;;  %v392_v40 = vsub.f32 %v376_v43, %v384_v58 }
  0x5b   : > { %v385_v12 = vmul.f32 %v1107_v51, %v1106_v59  ;;  %v463_v52 = vadd.f32 %v462_v63, %v456_v25  ;;  %v398_v21 = vmul.f32 %v390_v3, %v390_v3  ;;  %v468_v13 = vadd.f32 %v467_v0, %v396_v26 }
  0x5c   : > { %v399_v7 = vmul.f32 %v391_v32, %v391_v32  ;;  %v400_v55 = vmul.f32 %v392_v40, %v392_v40 }
  0x5d   : > { %v464_v4 = vadd.f32 %v463_v52, %v457_v31  ;;  %v393_v6 = vsub.f32 %v377_v54, %v385_v12  ;;  %v469_v8 = vadd.f32 %v468_v13, %v397_v20 }
  0x5f   : > { %465 = vadd.xlane.f32.xlu0 %v464_v4  ;;  %v470_v11 = vadd.f32 %v469_v8, %v398_v21  ;;  %v401_v15 = vmul.f32 %v393_v6, %v393_v6 }
  0x61   : > { %v471_v10 = vadd.f32 %v470_v11, %v399_v7 }
  0x63   : > { %v472_v9 = vadd.f32 %v471_v10, %v400_v55 }
  0x65   : > { %v473_v57 = vadd.f32 %v472_v9, %v401_v15 }
  0x67   : > { %474 = vadd.xlane.f32.xlu0 %v473_v57 }
  0xd2   : > { %v466_v5 = vpop.xlane.xlu0 %465 }
  0xd3   : > { %487 = vst [vmem:[%s231_s9] sm:$0xff] %v466_v5 }
  0xda   : > { %v475_v28 = vpop.xlane.xlu0 %474 }
  0xdb   : > { %488 = vst [vmem:[%s231_s9 + $0x8] sm:$0xff] %v475_v28 }
  0xdc PF: > { %s12_s13 = sadd.s32 1, %s723_s13   ;;  %s1108_s9 = smov %s711_s10 }
  0xdd   : > { %p9_p11 = scmp.ge.s32.totalorder %s12_s13, 4   ;;  %s1109_s10 = smov %s775_s17 }
  0xde   : > { %s1110_s11 = smov %s719_s12  ;;  %s1111_s12 = smov %s1113_s14 }
  0xdf   :  { %11 = sbr.rel (!%p9_p11) target bundleno = 3 (0x3), region = 99 }

</bundles_post_ra>
